<compile_context>
chip_gen: v7x
topology: tpu7x:2x2x1
jax: 0.10.0
libtpu: 0.0.40
codegen_flags: <defaults>
</compile_context>

<pallas_src>
import functools

import jax
import jax.numpy as jnp
from jax.experimental import pallas as pl
from jax.experimental.pallas import tpu as pltpu

LEAKY_SLOPE = 0.01  # torch.nn.LeakyReLU default negative_slope
HIDDEN = 256


def _leaky_relu(x):
    # max(x, slope*x) == LeakyReLU(x) for 0 <= slope <= 1 (matches torch at 0).
    return jnp.maximum(x, LEAKY_SLOPE * x)


def _round_up(a, m):
    return (a + m - 1) // m * m


def generator_kernel(x_ref,
                     w1_ref, b1_ref,
                     w2_ref, b2_ref,
                     w3_ref, b3_ref,
                     w4_ref, b4_ref,
                     o_ref):
    """One batch-tile of the 4-layer MLP, fully fused (MXU matmuls + VPU/EUP)."""
    mm_dtype = w1_ref.dtype  # bf16 (fast path) or f32

    # In-kernel cast of the input (no wrapper pad/astype pass over HBM).
    x = x_ref[...].astype(mm_dtype)
    h = jnp.dot(x, w1_ref[...], preferred_element_type=jnp.float32) + b1_ref[...]
    h = _leaky_relu(h).astype(mm_dtype)

    h = jnp.dot(h, w2_ref[...], preferred_element_type=jnp.float32) + b2_ref[...]
    h = _leaky_relu(h).astype(mm_dtype)

    h = jnp.dot(h, w3_ref[...], preferred_element_type=jnp.float32) + b3_ref[...]
    h = _leaky_relu(h).astype(mm_dtype)

    h = jnp.dot(h, w4_ref[...], preferred_element_type=jnp.float32) + b4_ref[...]
    o_ref[...] = jnp.tanh(h).astype(o_ref.dtype)


def _pick_batch_tile(B, requested):
    """Sublane-aligned batch tile: cap, don't force a split.

    Single maximal tile for small/medium batches; large batches get
    ceil(B/tile) steps, which "parallel" semantics shards across TensorCores
    on megacore parts (v7x).  Hard cap 8192 rows for v7x's 64 MiB VMEM.
    """
    requested = min(max(requested, 8), 8192)
    if B <= 8:
        return 8
    # Largest multiple of 8 that is <= min(requested, B): keeps every block's
    # first dim <= the array dim (ragged tail handled by Pallas masking).
    return min(requested, B) // 8 * 8


@functools.partial(jax.jit, static_argnames=("batch_tile", "use_bf16"))
def generator_forward(x, params, batch_tile=2048, use_bf16=True):
    """x: (B, z_dim) float32.  params: dict of weights/biases.  Returns (B, data_dim) f32."""
    B, z_dim = x.shape
    hidden = params["w1"].shape[1]
    data_dim = params["w4"].shape[1]

    mm_dtype = jnp.bfloat16 if use_bf16 else jnp.float32

    # Only the tiny B < 8 case needs row padding (sublane minimum).
    B_eff = max(B, 8)
    x_in = x if B_eff == B else jnp.pad(x, ((0, B_eff - B), (0, 0)))

    # Weights are tiny (<1 MiB total) -> the cast is negligible wrapper work.
    w1 = params["w1"].astype(mm_dtype)
    w2 = params["w2"].astype(mm_dtype)
    w3 = params["w3"].astype(mm_dtype)
    w4 = params["w4"].astype(mm_dtype)
    b1 = params["b1"].astype(jnp.float32)
    b2 = params["b2"].astype(jnp.float32)
    b3 = params["b3"].astype(jnp.float32)
    b4 = params["b4"].astype(jnp.float32)

    tile = _pick_batch_tile(B_eff, batch_tile)
    grid = (pl.cdiv(B_eff, tile),)

    def full_spec(shape):
        # Whole-array block, same block every grid step -> stays VMEM-resident.
        return pl.BlockSpec(shape, lambda i: (0,) * len(shape))

    flops = 2 * B_eff * (z_dim * hidden + 2 * hidden * hidden + hidden * data_dim)
    bytes_accessed = (
        x_in.size * x_in.dtype.itemsize
        + sum(a.size * a.dtype.itemsize for a in (w1, w2, w3, w4, b1, b2, b3, b4))
        + B_eff * data_dim * 4
    )
    cost = pl.CostEstimate(
        flops=flops,
        transcendentals=B_eff * data_dim,  # tanh
        bytes_accessed=bytes_accessed,
    )

    out = pl.pallas_call(
        generator_kernel,
        out_shape=jax.ShapeDtypeStruct((B_eff, data_dim), jnp.float32),
        grid_spec=pltpu.PrefetchScalarGridSpec(
            num_scalar_prefetch=0,
            grid=grid,
            in_specs=[
                pl.BlockSpec((tile, z_dim), lambda i: (i, 0)),            # x tile (f32)
                full_spec((z_dim, hidden)),   full_spec((1, hidden)),     # w1, b1
                full_spec((hidden, hidden)),  full_spec((1, hidden)),     # w2, b2
                full_spec((hidden, hidden)),  full_spec((1, hidden)),     # w3, b3
                full_spec((hidden, data_dim)), full_spec((1, data_dim)),  # w4, b4
            ],
            out_specs=pl.BlockSpec((tile, data_dim), lambda i: (i, 0)),
        ),
        compiler_params=pltpu.CompilerParams(
            dimension_semantics=("parallel",),
        ),
        cost_estimate=cost,
    )(x_in, w1, b1, w2, b2, w3, b3, w4, b4)

    return out if B_eff == B else out[:B]


def init_generator_params(key, z_dim, data_dim, hidden=HIDDEN):
    """Deterministic init matching the nn.Linear shapes (weights stored as (in, out))."""
    ks = jax.random.split(key, 8)
    dims = [(z_dim, hidden), (hidden, hidden), (hidden, hidden), (hidden, data_dim)]
    params = {}
    for idx, (fan_in, fan_out) in enumerate(dims, start=1):
        bound = 1.0 / jnp.sqrt(fan_in)  # PyTorch default uniform(-1/sqrt(fan_in), ...)
        params[f"w{idx}"] = jax.random.uniform(
            ks[2 * (idx - 1)], (fan_in, fan_out), jnp.float32, -bound, bound)
        params[f"b{idx}"] = jax.random.uniform(
            ks[2 * (idx - 1) + 1], (1, fan_out), jnp.float32, -bound, bound)
    return params


def generator_reference(x, params):
    """Pure-JAX f32 reference for correctness checking."""
    h = _leaky_relu(x @ params["w1"] + params["b1"])
    h = _leaky_relu(h @ params["w2"] + params["b2"])
    h = _leaky_relu(h @ params["w3"] + params["b3"])
    return jnp.tanh(h @ params["w4"] + params["b4"])


if __name__ == "__main__":
    z_dim, data_dim, batch = 32, 64, 8

    key = jax.random.PRNGKey(0)
    k_params, k_x = jax.random.split(key)

    params = init_generator_params(k_params, z_dim, data_dim)
    x = jax.random.normal(k_x, (batch, z_dim), dtype=jnp.float32)

    ref = generator_reference(x, params)

    # f32 path: bit-tight check of kernel structure / tiling / masking.
    out_f32 = jax.block_until_ready(generator_forward(x, params, use_bf16=False))
    assert out_f32.shape == (batch, data_dim), out_f32.shape
    assert jnp.allclose(out_f32, ref, atol=1e-5, rtol=1e-5), "f32 mismatch vs reference"

    # bf16 fast path (default): loose tolerance vs f32 reference.
    out_bf16 = jax.block_until_ready(generator_forward(x, params))
    assert out_bf16.shape == (batch, data_dim), out_bf16.shape
    assert jnp.allclose(out_bf16, ref, atol=5e-2, rtol=5e-2), "bf16 mismatch vs reference"

    print("KERNEL_OK")
</pallas_src>

<mosaic_0001>
module attributes {stable_mosaic.version = 11 : i64} {
  func.func @generator_kernel(%arg0: i32, %arg1: memref<8x32xf32, #tpu.memory_space<vmem>>, %arg2: memref<32x256xf32, #tpu.memory_space<vmem>>, %arg3: memref<1x256xf32, #tpu.memory_space<vmem>>, %arg4: memref<256x256xf32, #tpu.memory_space<vmem>>, %arg5: memref<1x256xf32, #tpu.memory_space<vmem>>, %arg6: memref<256x256xf32, #tpu.memory_space<vmem>>, %arg7: memref<1x256xf32, #tpu.memory_space<vmem>>, %arg8: memref<256x64xf32, #tpu.memory_space<vmem>>, %arg9: memref<1x64xf32, #tpu.memory_space<vmem>>, %arg10: memref<8x64xf32, #tpu.memory_space<vmem>>) attributes {dimension_semantics = [#tpu.dimension_semantics<parallel>], iteration_bounds = array<i64: 1>, scalar_prefetch = 0 : i64, scratch_operands = 0 : i64, tpu.core_type = #tpu.core_type<tc>, window_params = [{transform_indices = @transform_0, window_bounds = array<i64: 8, 32>}, {pipeline_mode = #tpu.pipeline_mode<synchronous>, transform_indices = @transform_1, window_bounds = array<i64: 32, 256>}, {pipeline_mode = #tpu.pipeline_mode<synchronous>, transform_indices = @transform_2, window_bounds = array<i64: 1, 256>}, {pipeline_mode = #tpu.pipeline_mode<synchronous>, transform_indices = @transform_3, window_bounds = array<i64: 256, 256>}, {pipeline_mode = #tpu.pipeline_mode<synchronous>, transform_indices = @transform_4, window_bounds = array<i64: 1, 256>}, {pipeline_mode = #tpu.pipeline_mode<synchronous>, transform_indices = @transform_5, window_bounds = array<i64: 256, 256>}, {pipeline_mode = #tpu.pipeline_mode<synchronous>, transform_indices = @transform_6, window_bounds = array<i64: 1, 256>}, {pipeline_mode = #tpu.pipeline_mode<synchronous>, transform_indices = @transform_7, window_bounds = array<i64: 256, 64>}, {pipeline_mode = #tpu.pipeline_mode<synchronous>, transform_indices = @transform_8, window_bounds = array<i64: 1, 64>}, {transform_indices = @transform_9, window_bounds = array<i64: 8, 64>}]} {
    %c0 = arith.constant 0 : index
    %c0_0 = arith.constant 0 : index
    %0 = vector.load %arg1[%c0, %c0_0] : memref<8x32xf32, #tpu.memory_space<vmem>>, vector<8x32xf32>
    %c0_1 = arith.constant 0 : index
    %c0_2 = arith.constant 0 : index
    %1 = vector.load %arg2[%c0_1, %c0_2] : memref<32x256xf32, #tpu.memory_space<vmem>>, vector<32x256xf32>
    %cst = arith.constant dense<0.000000e+00> : vector<8x256xf32>
    %2 = tpu.matmul %0, %1, %cst {dimension_numbers = #tpu.dot_dimension_numbers<[1], [0], [0], [1], [0, 0, 1, 1], [], []>} : vector<8x32xf32>, vector<32x256xf32>, vector<8x256xf32> -> vector<8x256xf32>
    %c0_3 = arith.constant 0 : index
    %c0_4 = arith.constant 0 : index
    %3 = vector.load %arg3[%c0_3, %c0_4] : memref<1x256xf32, #tpu.memory_space<vmem>>, vector<1x256xf32>
    %4 = vector.broadcast %3 : vector<1x256xf32> to vector<8x256xf32>
    %5 = arith.addf %2, %4 : vector<8x256xf32>
    %cst_5 = arith.constant 0.00999999977 : f32
    %6 = vector.broadcast %cst_5 : f32 to vector<8x256xf32>
    %7 = arith.mulf %6, %5 : vector<8x256xf32>
    %8 = arith.maximumf %5, %7 : vector<8x256xf32>
    %c0_6 = arith.constant 0 : index
    %c0_7 = arith.constant 0 : index
    %9 = vector.load %arg4[%c0_6, %c0_7] : memref<256x256xf32, #tpu.memory_space<vmem>>, vector<256x256xf32>
    %cst_8 = arith.constant dense<0.000000e+00> : vector<8x256xf32>
    %10 = tpu.matmul %8, %9, %cst_8 {dimension_numbers = #tpu.dot_dimension_numbers<[1], [0], [0], [1], [0, 0, 1, 1], [], []>} : vector<8x256xf32>, vector<256x256xf32>, vector<8x256xf32> -> vector<8x256xf32>
    %c0_9 = arith.constant 0 : index
    %c0_10 = arith.constant 0 : index
    %11 = vector.load %arg5[%c0_9, %c0_10] : memref<1x256xf32, #tpu.memory_space<vmem>>, vector<1x256xf32>
    %12 = vector.broadcast %11 : vector<1x256xf32> to vector<8x256xf32>
    %13 = arith.addf %10, %12 : vector<8x256xf32>
    %cst_11 = arith.constant 0.00999999977 : f32
    %14 = vector.broadcast %cst_11 : f32 to vector<8x256xf32>
    %15 = arith.mulf %14, %13 : vector<8x256xf32>
    %16 = arith.maximumf %13, %15 : vector<8x256xf32>
    %c0_12 = arith.constant 0 : index
    %c0_13 = arith.constant 0 : index
    %17 = vector.load %arg6[%c0_12, %c0_13] : memref<256x256xf32, #tpu.memory_space<vmem>>, vector<256x256xf32>
    %cst_14 = arith.constant dense<0.000000e+00> : vector<8x256xf32>
    %18 = tpu.matmul %16, %17, %cst_14 {dimension_numbers = #tpu.dot_dimension_numbers<[1], [0], [0], [1], [0, 0, 1, 1], [], []>} : vector<8x256xf32>, vector<256x256xf32>, vector<8x256xf32> -> vector<8x256xf32>
    %c0_15 = arith.constant 0 : index
    %c0_16 = arith.constant 0 : index
    %19 = vector.load %arg7[%c0_15, %c0_16] : memref<1x256xf32, #tpu.memory_space<vmem>>, vector<1x256xf32>
    %20 = vector.broadcast %19 : vector<1x256xf32> to vector<8x256xf32>
    %21 = arith.addf %18, %20 : vector<8x256xf32>
    %cst_17 = arith.constant 0.00999999977 : f32
    %22 = vector.broadcast %cst_17 : f32 to vector<8x256xf32>
    %23 = arith.mulf %22, %21 : vector<8x256xf32>
    %24 = arith.maximumf %21, %23 : vector<8x256xf32>
    %c0_18 = arith.constant 0 : index
    %c0_19 = arith.constant 0 : index
    %25 = vector.load %arg8[%c0_18, %c0_19] : memref<256x64xf32, #tpu.memory_space<vmem>>, vector<256x64xf32>
    %cst_20 = arith.constant dense<0.000000e+00> : vector<8x64xf32>
    %26 = tpu.matmul %24, %25, %cst_20 {dimension_numbers = #tpu.dot_dimension_numbers<[1], [0], [0], [1], [0, 0, 1, 1], [], []>} : vector<8x256xf32>, vector<256x64xf32>, vector<8x64xf32> -> vector<8x64xf32>
    %c0_21 = arith.constant 0 : index
    %c0_22 = arith.constant 0 : index
    %27 = vector.load %arg9[%c0_21, %c0_22] : memref<1x64xf32, #tpu.memory_space<vmem>>, vector<1x64xf32>
    %28 = vector.broadcast %27 : vector<1x64xf32> to vector<8x64xf32>
    %29 = arith.addf %26, %28 : vector<8x64xf32>
    %30 = math.tanh %29 : vector<8x64xf32>
    %c0_23 = arith.constant 0 : index
    %c0_24 = arith.constant 0 : index
    %31 = vector.load %arg10[%c0_23, %c0_24] : memref<8x64xf32, #tpu.memory_space<vmem>>, vector<8x64xf32>
    tpu.vector_store %arg10[%c0_23, %c0_24], %30 {strides = array<i32>} : memref<8x64xf32, #tpu.memory_space<vmem>>, vector<8x64xf32>,
    return
  }
  func.func @transform_0(%arg0: i32) -> (i32, i32) {
    %c0_i32 = arith.constant 0 : i32
    %c0_i32_0 = arith.constant 0 : i32
    return %arg0, %c0_i32 : i32, i32
  }
  func.func @transform_1(%arg0: i32) -> (i32, i32) {
    %c0_i32 = arith.constant 0 : i32
    %c0_i32_0 = arith.constant 0 : i32
    %c0_i32_1 = arith.constant 0 : i32
    return %c0_i32, %c0_i32_0 : i32, i32
  }
  func.func @transform_2(%arg0: i32) -> (i32, i32) {
    %c0_i32 = arith.constant 0 : i32
    %c0_i32_0 = arith.constant 0 : i32
    %c0_i32_1 = arith.constant 0 : i32
    return %c0_i32, %c0_i32_0 : i32, i32
  }
  func.func @transform_3(%arg0: i32) -> (i32, i32) {
    %c0_i32 = arith.constant 0 : i32
    %c0_i32_0 = arith.constant 0 : i32
    %c0_i32_1 = arith.constant 0 : i32
    return %c0_i32, %c0_i32_0 : i32, i32
  }
  func.func @transform_4(%arg0: i32) -> (i32, i32) {
    %c0_i32 = arith.constant 0 : i32
    %c0_i32_0 = arith.constant 0 : i32
    %c0_i32_1 = arith.constant 0 : i32
    return %c0_i32, %c0_i32_0 : i32, i32
  }
  func.func @transform_5(%arg0: i32) -> (i32, i32) {
    %c0_i32 = arith.constant 0 : i32
    %c0_i32_0 = arith.constant 0 : i32
    %c0_i32_1 = arith.constant 0 : i32
    return %c0_i32, %c0_i32_0 : i32, i32
  }
  func.func @transform_6(%arg0: i32) -> (i32, i32) {
    %c0_i32 = arith.constant 0 : i32
    %c0_i32_0 = arith.constant 0 : i32
    %c0_i32_1 = arith.constant 0 : i32
    return %c0_i32, %c0_i32_0 : i32, i32
  }
  func.func @transform_7(%arg0: i32) -> (i32, i32) {
    %c0_i32 = arith.constant 0 : i32
    %c0_i32_0 = arith.constant 0 : i32
    %c0_i32_1 = arith.constant 0 : i32
    return %c0_i32, %c0_i32_0 : i32, i32
  }
  func.func @transform_8(%arg0: i32) -> (i32, i32) {
    %c0_i32 = arith.constant 0 : i32
    %c0_i32_0 = arith.constant 0 : i32
    %c0_i32_1 = arith.constant 0 : i32
    return %c0_i32, %c0_i32_0 : i32, i32
  }
  func.func @transform_9(%arg0: i32) -> (i32, i32) {
    %c0_i32 = arith.constant 0 : i32
    %c0_i32_0 = arith.constant 0 : i32
    return %arg0, %c0_i32 : i32, i32
  }
}

</mosaic_0001>

<bundles_post_ra>
// kernel: generator_forward.1
= control target key start
LH: loop header
LB: loop body
LE: loop exit
PB: predicated region body
PF: predicated region fallthrough
CT: control target
= control target key end

     0   :  { %14 = vsyncpa [#allocation3], 0  ;;  %s1113_s0 = inlined_call_operand.vmem [shape: f32[8,32], index: 0, kind: input, shape index: {}]   ;;  %s1114_s1 = inlined_call_operand.vmem [shape: f32[32,256], index: 1, kind: input, shape index: {}]   ;;  %s1115_s2 = inlined_call_operand.vmem [shape: f32[1,256], index: 2, kind: input, shape index: {}]   ;;  %s1116_s3 = inlined_call_operand.hbm [shape: f32[256,256], index: 3, kind: input, shape index: {}]   ;;  %s1117_s4 = inlined_call_operand.vmem [shape: f32[1,256], index: 4, kind: input, shape index: {}]   ;;  %s1118_s5 = inlined_call_operand.hbm [shape: f32[256,256], index: 5, kind: input, shape index: {}]   ;;  %s1119_s6 = inlined_call_operand.vmem [shape: f32[1,256], index: 6, kind: input, shape index: {}]   ;;  %s1120_s7 = inlined_call_operand.vmem [shape: f32[256,64], index: 7, kind: input, shape index: {}]   ;;  %s1121_s8 = inlined_call_operand.vmem [shape: f32[1,64], index: 8, kind: input, shape index: {}]   ;;  %s1122_s9 = inlined_call_operand.hbm [shape: f32[8,64], index: 9, kind: output, shape index: {}]  }
   0x1   :  { %15 = vsyncpa [#allocation6], 0 }
   0x2   :  { %16 = vsyncpa [#allocation4], 0  ;;  %s876_s30 = smov [#allocation2]   ;;  %s804_s13 = scalar_lea.hbm %s1116_s3, 8192 }
   0x3   :  { %s28_s10 = sshll.u32 %s876_s30, 4  ;;  %p805_p0 = scmp.ne.s32.totalorder %s1116_s3, %s804_s13  ;;  %s29_s10 = int_to_ptr.vmem [resolvable:$true] %s28_s10 }
   0x4   :  { %p808_p1 = scmp.lt.u32.totalorder %s804_s13, %s1116_s3 }
   0x6   :  { %p810_p2 = pnand %p808_p1, %p805_p0 }
   0x8   :  { %813 = shalt.err (!%p810_p2)
}
   0x9   :  { %s814_s18 = scalar_lea.vmem %s29_s10, 8192  ;;  %p819_p4 = scmp.lt.s32.totalorder %s29_s10, %s29_s10 }
   0xa   :  { %p815_p3 = scmp.ne.s32.totalorder %s29_s10, %s814_s18  ;;  %p820_p5 = scmp.lt.s32.totalorder %s814_s18, %s814_s18 }
   0xc   :  { %p821_p6 = por %p820_p5, %p819_p4 }
   0xe   :  { %p822_p7 = pnand %p821_p6, %p815_p3 }
  0x10   :  { %825 = shalt.err (!%p822_p7)
}
  0x11   :  { %s877_s19 = smov 256   ;;  %s878_s20 = smov 16  }
  0x12   :  { %34 = dma.hbm_to_vmem [thread:$0]  %s1116_s3, 8192, %s29_s10, [#allocation3], %s877_s19, %s877_s19, %s878_s20  }
  0x13   :  { %s879_s23 = smov [#allocation5]   ;;  %s826_s27 = scalar_lea.hbm %s1118_s5, 8192 }
  0x14   :  { %s42_s24 = sshll.u32 %s879_s23, 4  ;;  %p827_p8 = scmp.ne.s32.totalorder %s1118_s5, %s826_s27  ;;  %s43_s24 = int_to_ptr.vmem [resolvable:$true] %s42_s24 }
  0x15   :  { %p830_p9 = scmp.lt.u32.totalorder %s826_s27, %s1118_s5 }
  0x17   :  { %p832_p10 = pnand %p830_p9, %p827_p8 }
  0x19   :  { %835 = shalt.err (!%p832_p10)
}
  0x1a   :  { %s836_s12 = scalar_lea.vmem %s43_s24, 8192  ;;  %p841_p12 = scmp.lt.s32.totalorder %s43_s24, %s43_s24 }
  0x1b   :  { %p837_p11 = scmp.ne.s32.totalorder %s43_s24, %s836_s12  ;;  %p842_p13 = scmp.lt.s32.totalorder %s836_s12, %s836_s12 }
  0x1d   :  { %p843_p0 = por %p842_p13, %p841_p12 }
  0x1f   :  { %p844_p1 = pnand %p843_p0, %p837_p11 }
  0x21   :  { %847 = shalt.err (!%p844_p1)
}
  0x22   :  { %48 = dma.hbm_to_vmem [thread:$0]  %s1118_s5, 8192, %s43_s24, [#allocation6], %s877_s19, %s877_s19, %s878_s20  }
  0x23   :  { %870 = dma.done.wait [#allocation3], 8192  }
  0x24   :  { %871 = vsyncadd [#allocation3], 4294959104 }
  0x25   :  { %872 = dma.done.wait [#allocation6], 8192  }
  0x26   :  { %873 = vsyncadd [#allocation6], 4294959104  ;;  %v880_v0 = vmov 0.0   ;;  %v63_v1 = vld [vmem:[%s1114_s1 + $0x8] sm:$0xff]  ;;  %v65_v2 = vld [vmem:[%s1114_s1 + $0x18] sm:$0xff]  ;;  %vm82_vm0 = vcmask 261120  }
  0x27   :  { %150 = vmatprep.mubr.f32.mxu0 %v880_v0  ;;  %v62_v3 = vld [vmem:[%s1114_s1] sm:$0xff]  ;;  %v628_v4 = vpack.c.bf16 %v65_v2, %v63_v1  ;;  %v64_v5 = vld [vmem:[%s1114_s1 + $0x10] sm:$0xff]  ;;  %v67_v6 = vld [vmem:[%s1114_s1 + $0x28] sm:$0xff]  ;;  %vm573_vm1 = vcmask 523264  }
  0x28   :  { %v69_v7 = vld [vmem:[%s1114_s1 + $0x38] sm:$0xff]  ;;  %v630_v8 = vpack.c.bf16 %v64_v5, %v62_v3  ;;  %v66_v10 = vld [vmem:[%s1114_s1 + $0x20] sm:$0xff]  ;;  %v68_v11 = vld [vmem:[%s1114_s1 + $0x30] sm:$0xff] }
  0x29   :  { %v632_v9 = vpack.c.bf16 %v69_v7, %v67_v6  ;;  %629 = vmatprep.subr.bf16.mxu0 %v628_v4  ;;  %v162_v12 = vld [vmem:[#allocation2 + $0x8] sm:$0xff]  ;;  %v164_v13 = vld [vmem:[#allocation2 + $0x18] sm:$0xff]  ;;  %v161_v14 = vld [vmem:[#allocation2] sm:$0xff]  ;;  %v634_v15 = vpack.c.bf16 %v68_v11, %v66_v10 }
  0x2a   :  { %631 = vmatpush1.bf16.msra.mxu0 %v630_v8  ;;  %v636_v16 = vpack.c.bf16 %v164_v13, %v162_v12  ;;  %v163_v17 = vld [vmem:[#allocation2 + $0x10] sm:$0xff]  ;;  %v166_v18 = vld [vmem:[#allocation2 + $0x28] sm:$0xff]  ;;  %v168_v19 = vld [vmem:[#allocation2 + $0x38] sm:$0xff] }
  0x2b   :  { %633 = vmatprep.subr.bf16.mxu0 %v632_v9  ;;  %v638_v20 = vpack.c.bf16 %v163_v17, %v161_v14  ;;  %v640_v21 = vpack.c.bf16 %v168_v19, %v166_v18  ;;  %v165_v22 = vld [vmem:[#allocation2 + $0x20] sm:$0xff]  ;;  %v167_v23 = vld [vmem:[#allocation2 + $0x30] sm:$0xff]  ;;  %v170_v24 = vld [vmem:[#allocation2 + $0x48] sm:$0xff] }
  0x2c   :  { %637 = vmatprep.subr.bf16.mxu1 %v636_v16  ;;  %v172_v25 = vld [vmem:[#allocation2 + $0x58] sm:$0xff]  ;;  %v642_v26 = vpack.c.bf16 %v167_v23, %v165_v22  ;;  %v61_v27 = vld [vmem:[%s1113_s0] sm:$0xff]  ;;  %v171_v30 = vld [vmem:[#allocation2 + $0x50] sm:$0xff] }
  0x2d   :  { %639 = vmatpush1.bf16.msra.mxu1 %v638_v20  ;;  %v644_v28 = vpack.c.bf16 %v172_v25, %v170_v24  ;;  %v169_v29 = vld [vmem:[#allocation2 + $0x40] sm:$0xff]  ;;  %v174_v31 = vld [vmem:[#allocation2 + $0x68] sm:$0xff]  ;;  %v176_v32 = vld [vmem:[#allocation2 + $0x78] sm:$0xff] }
  0x2e   :  { %635 = vmatpush1.bf16.msra.mxu0 %v634_v15  ;;  %641 = vmatprep.subr.bf16.mxu1 %v640_v21  ;;  %v646_v33 = vpack.c.bf16 %v171_v30, %v169_v29  ;;  %v648_v34 = vpack.c.bf16 %v176_v32, %v174_v31  ;;  %v173_v35 = vld [vmem:[#allocation2 + $0x60] sm:$0xff]  ;;  %v175_v36 = vld [vmem:[#allocation2 + $0x70] sm:$0xff]  ;;  %v178_v37 = vld [vmem:[#allocation2 + $0x88] sm:$0xff] }
  0x2f   :  { %v180_v38 = vld [vmem:[#allocation2 + $0x98] sm:$0xff]  ;;  %v650_v39 = vpack.c.bf16 %v175_v36, %v173_v35  ;;  %v177_v41 = vld [vmem:[#allocation2 + $0x80] sm:$0xff]  ;;  %v179_v42 = vld [vmem:[#allocation2 + $0x90] sm:$0xff] }
  0x30   :  { %v652_v40 = vpack.c.bf16 %v180_v38, %v178_v37  ;;  %v182_v43 = vld [vmem:[#allocation2 + $0xa8] sm:$0xff]  ;;  %v184_v44 = vld [vmem:[#allocation2 + $0xb8] sm:$0xff]  ;;  %v654_v45 = vpack.c.bf16 %v179_v42, %v177_v41  ;;  %v181_v47 = vld [vmem:[#allocation2 + $0xa0] sm:$0xff] }
  0x31   :  { %591 = vmatmul.mubr.msk.f32.vlgmr.msra.gmra.mrb[0].mxu0 %vm82_vm0, %v61_v27  ;;  %643 = vmatpush1.bf16.msra.mxu1 %v642_v26  ;;  %v656_v46 = vpack.c.bf16 %v184_v44, %v182_v43  ;;  %v183_v48 = vld [vmem:[#allocation2 + $0xb0] sm:$0xff]  ;;  %v186_v49 = vld [vmem:[#allocation2 + $0xc8] sm:$0xff]  ;;  %v188_v50 = vld [vmem:[#allocation2 + $0xd8] sm:$0xff] }
  0x32   :  { %645 = vmatprep.subr.bf16.mxu1 %v644_v28  ;;  %v658_v51 = vpack.c.bf16 %v183_v48, %v181_v47  ;;  %v660_v52 = vpack.c.bf16 %v188_v50, %v186_v49  ;;  %v185_v53 = vld [vmem:[#allocation2 + $0xc0] sm:$0xff]  ;;  %v187_v54 = vld [vmem:[#allocation2 + $0xd0] sm:$0xff]  ;;  %v190_v55 = vld [vmem:[#allocation2 + $0xe8] sm:$0xff] }
  0x33   :  { %v192_v56 = vld [vmem:[#allocation2 + $0xf8] sm:$0xff]  ;;  %v662_v57 = vpack.c.bf16 %v187_v54, %v185_v53  ;;  %v189_v59 = vld [vmem:[#allocation2 + $0xe0] sm:$0xff]  ;;  %v191_v60 = vld [vmem:[#allocation2 + $0xf0] sm:$0xff] }
  0x34   :  { %v664_v58 = vpack.c.bf16 %v192_v56, %v190_v55  ;;  %v194_v61 = vld [vmem:[#allocation2 + $0x108] sm:$0xff]  ;;  %v196_v62 = vld [vmem:[#allocation2 + $0x118] sm:$0xff]  ;;  %v666_v63 = vpack.c.bf16 %v191_v60, %v189_v59  ;;  %v193_v1 = vld [vmem:[#allocation2 + $0x100] sm:$0xff] }
  0x35   :  { %647 = vmatpush1.bf16.msra.mxu1 %v646_v33  ;;  %v668_v0 = vpack.c.bf16 %v196_v62, %v194_v61  ;;  %v195_v2 = vld [vmem:[#allocation2 + $0x110] sm:$0xff]  ;;  %v198_v3 = vld [vmem:[#allocation2 + $0x128] sm:$0xff]  ;;  %v200_v4 = vld [vmem:[#allocation2 + $0x138] sm:$0xff] }
  0x36   :  { %649 = vmatprep.subr.bf16.mxu1 %v648_v34  ;;  %v670_v5 = vpack.c.bf16 %v195_v2, %v193_v1  ;;  %v672_v6 = vpack.c.bf16 %v200_v4, %v198_v3  ;;  %v197_v7 = vld [vmem:[#allocation2 + $0x120] sm:$0xff]  ;;  %v199_v8 = vld [vmem:[#allocation2 + $0x130] sm:$0xff]  ;;  %v202_v9 = vld [vmem:[#allocation2 + $0x148] sm:$0xff] }
  0x37   :  { %v204_v10 = vld [vmem:[#allocation2 + $0x158] sm:$0xff]  ;;  %v674_v11 = vpack.c.bf16 %v199_v8, %v197_v7  ;;  %v201_v13 = vld [vmem:[#allocation2 + $0x140] sm:$0xff]  ;;  %v203_v14 = vld [vmem:[#allocation2 + $0x150] sm:$0xff] }
  0x38   :  { %v676_v12 = vpack.c.bf16 %v204_v10, %v202_v9  ;;  %v206_v15 = vld [vmem:[#allocation2 + $0x168] sm:$0xff]  ;;  %v208_v16 = vld [vmem:[#allocation2 + $0x178] sm:$0xff]  ;;  %v678_v17 = vpack.c.bf16 %v203_v14, %v201_v13  ;;  %v205_v19 = vld [vmem:[#allocation2 + $0x160] sm:$0xff] }
  0x39   :  { %651 = vmatpush1.bf16.msra.mxu1 %v650_v39  ;;  %v680_v18 = vpack.c.bf16 %v208_v16, %v206_v15  ;;  %v207_v20 = vld [vmem:[#allocation2 + $0x170] sm:$0xff]  ;;  %v210_v21 = vld [vmem:[#allocation2 + $0x188] sm:$0xff]  ;;  %v212_v22 = vld [vmem:[#allocation2 + $0x198] sm:$0xff] }
  0x3a   :  { %653 = vmatprep.subr.bf16.mxu1 %v652_v40  ;;  %v682_v23 = vpack.c.bf16 %v207_v20, %v205_v19  ;;  %v684_v24 = vpack.c.bf16 %v212_v22, %v210_v21  ;;  %v209_v25 = vld [vmem:[#allocation2 + $0x180] sm:$0xff]  ;;  %v211_v26 = vld [vmem:[#allocation2 + $0x190] sm:$0xff]  ;;  %v214_v27 = vld [vmem:[#allocation2 + $0x1a8] sm:$0xff] }
  0x3b   :  { %v216_v28 = vld [vmem:[#allocation2 + $0x1b8] sm:$0xff]  ;;  %v686_v29 = vpack.c.bf16 %v211_v26, %v209_v25  ;;  %v213_v31 = vld [vmem:[#allocation2 + $0x1a0] sm:$0xff]  ;;  %v215_v32 = vld [vmem:[#allocation2 + $0x1b0] sm:$0xff] }
  0x3c   :  { %v688_v30 = vpack.c.bf16 %v216_v28, %v214_v27  ;;  %v690_v33 = vpack.c.bf16 %v215_v32, %v213_v31  ;;  %v218_v34 = vld [vmem:[#allocation2 + $0x1c8] sm:$0xff]  ;;  %v220_v35 = vld [vmem:[#allocation2 + $0x1d8] sm:$0xff]  ;;  %v217_v37 = vld [vmem:[#allocation2 + $0x1c0] sm:$0xff] }
  0x3d   :  { %655 = vmatpush1.bf16.msra.mxu1 %v654_v45  ;;  %v692_v36 = vpack.c.bf16 %v220_v35, %v218_v34  ;;  %v219_v38 = vld [vmem:[#allocation2 + $0x1d0] sm:$0xff]  ;;  %v222_v40 = vld [vmem:[#allocation2 + $0x1e8] sm:$0xff]  ;;  %v224_v41 = vld [vmem:[#allocation2 + $0x1f8] sm:$0xff] }
  0x3e   :  { %657 = vmatprep.subr.bf16.mxu1 %v656_v46  ;;  %v694_v39 = vpack.c.bf16 %v219_v38, %v217_v37  ;;  %v696_v42 = vpack.c.bf16 %v224_v41, %v222_v40  ;;  %v221_v43 = vld [vmem:[#allocation2 + $0x1e0] sm:$0xff]  ;;  %v223_v44 = vld [vmem:[#allocation2 + $0x1f0] sm:$0xff]  ;;  %v313_v46 = vld [vmem:[#allocation5 + $0x8] sm:$0xff] }
  0x3f   :  { %v698_v45 = vpack.c.bf16 %v223_v44, %v221_v43  ;;  %v315_v47 = vld [vmem:[#allocation5 + $0x18] sm:$0xff]  ;;  %v312_v48 = vld [vmem:[#allocation5] sm:$0xff]  ;;  %v314_v50 = vld [vmem:[#allocation5 + $0x10] sm:$0xff] }
  0x40   :  { %v700_v49 = vpack.c.bf16 %v315_v47, %v313_v46  ;;  %v702_v53 = vpack.c.bf16 %v314_v50, %v312_v48  ;;  %v316_v55 = vld [vmem:[#allocation5 + $0x20] sm:$0xff]  ;;  %v318_v56 = vld [vmem:[#allocation5 + $0x30] sm:$0xff]  ;;  %v349_v35 = vld [vmem:[#allocation5 + $0x128] sm:$0xff] }
  0x41   :  { %659 = vmatpush1.bf16.msra.mxu1 %v658_v51  ;;  %v317_v51 = vld [vmem:[#allocation5 + $0x28] sm:$0xff]  ;;  %v706_v59 = vpack.c.bf16 %v318_v56, %v316_v55  ;;  %v320_v61 = vld [vmem:[#allocation5 + $0x40] sm:$0xff]  ;;  %v322_v62 = vld [vmem:[#allocation5 + $0x50] sm:$0xff] }
  0x42   :  { %661 = vmatprep.subr.bf16.mxu1 %v660_v52  ;;  %v319_v52 = vld [vmem:[#allocation5 + $0x38] sm:$0xff]  ;;  %701 = vmatprep.subr.bf16.mxu0 %v700_v49  ;;  %v710_v1 = vpack.c.bf16 %v322_v62, %v320_v61  ;;  %v324_v3 = vld [vmem:[#allocation5 + $0x60] sm:$0xff]  ;;  %v326_v4 = vld [vmem:[#allocation5 + $0x70] sm:$0xff] }
  0x43   :  { %v704_v54 = vpack.c.bf16 %v319_v52, %v317_v51  ;;  %703 = vmatpush1.bf16.msra.mxu0 %v702_v53  ;;  %v714_v7 = vpack.c.bf16 %v326_v4, %v324_v3  ;;  %v328_v9 = vld [vmem:[#allocation5 + $0x80] sm:$0xff]  ;;  %v330_v10 = vld [vmem:[#allocation5 + $0x90] sm:$0xff]  ;;  %v353_v41 = vld [vmem:[#allocation5 + $0x148] sm:$0xff] }
  0x44   :  { %v718_v13 = vpack.c.bf16 %v330_v10, %v328_v9  ;;  %v332_v15 = vld [vmem:[#allocation5 + $0xa0] sm:$0xff]  ;;  %v334_v16 = vld [vmem:[#allocation5 + $0xb0] sm:$0xff]  ;;  %v357_v47 = vld [vmem:[#allocation5 + $0x168] sm:$0xff] }
  0x45   :  { %663 = vmatpush1.bf16.msra.mxu1 %v662_v57  ;;  %v321_v57 = vld [vmem:[#allocation5 + $0x48] sm:$0xff]  ;;  %705 = vmatprep.subr.bf16.mxu0 %v704_v54  ;;  %v722_v19 = vpack.c.bf16 %v334_v16, %v332_v15  ;;  %v336_v21 = vld [vmem:[#allocation5 + $0xc0] sm:$0xff]  ;;  %v338_v22 = vld [vmem:[#allocation5 + $0xd0] sm:$0xff] }
  0x46   :  { %665 = vmatprep.subr.bf16.mxu1 %v664_v58  ;;  %v323_v58 = vld [vmem:[#allocation5 + $0x58] sm:$0xff]  ;;  %v726_v25 = vpack.c.bf16 %v338_v22, %v336_v21  ;;  %v340_v27 = vld [vmem:[#allocation5 + $0xe0] sm:$0xff]  ;;  %v342_v28 = vld [vmem:[#allocation5 + $0xf0] sm:$0xff] }
  0x47   :  { %v708_v60 = vpack.c.bf16 %v323_v58, %v321_v57  ;;  %707 = vmatpush1.bf16.msra.mxu0 %v706_v59  ;;  %v730_v31 = vpack.c.bf16 %v342_v28, %v340_v27  ;;  %v346_v34 = vld [vmem:[#allocation5 + $0x110] sm:$0xff]  ;;  %v359_v48 = vld [vmem:[#allocation5 + $0x178] sm:$0xff]  ;;  %v356_v51 = vld [vmem:[#allocation5 + $0x160] sm:$0xff] }
  0x48   :  { %v350_v40 = vld [vmem:[#allocation5 + $0x130] sm:$0xff]  ;;  %v744_v50 = vpack.c.bf16 %v359_v48, %v357_v47  ;;  %v361_v53 = vld [vmem:[#allocation5 + $0x188] sm:$0xff]  ;;  %v363_v54 = vld [vmem:[#allocation5 + $0x198] sm:$0xff] }
  0x49   :  { %667 = vmatpush1.bf16.msra.mxu1 %v666_v63  ;;  %v325_v63 = vld [vmem:[#allocation5 + $0x68] sm:$0xff]  ;;  %709 = vmatprep.subr.bf16.mxu0 %v708_v60  ;;  %v354_v46 = vld [vmem:[#allocation5 + $0x150] sm:$0xff]  ;;  %v748_v56 = vpack.c.bf16 %v363_v54, %v361_v53  ;;  %v360_v57 = vld [vmem:[#allocation5 + $0x180] sm:$0xff] }
  0x4a   :  { %669 = vmatprep.subr.bf16.mxu1 %v668_v0  ;;  %v327_v0 = vld [vmem:[#allocation5 + $0x78] sm:$0xff]  ;;  %v358_v52 = vld [vmem:[#allocation5 + $0x170] sm:$0xff]  ;;  %v365_v59 = vld [vmem:[#allocation5 + $0x1a8] sm:$0xff] }
  0x4b   :  { %v712_v2 = vpack.c.bf16 %v327_v0, %v325_v63  ;;  %711 = vmatpush1.bf16.msra.mxu0 %v710_v1  ;;  %v746_v55 = vpack.c.bf16 %v358_v52, %v356_v51  ;;  %v362_v58 = vld [vmem:[#allocation5 + $0x190] sm:$0xff]  ;;  %v367_v60 = vld [vmem:[#allocation5 + $0x1b8] sm:$0xff]  ;;  %v364_v63 = vld [vmem:[#allocation5 + $0x1a0] sm:$0xff] }
  0x4c   :  { %v750_v61 = vpack.c.bf16 %v362_v58, %v360_v57  ;;  %v752_v62 = vpack.c.bf16 %v367_v60, %v365_v59  ;;  %v366_v0 = vld [vmem:[#allocation5 + $0x1b0] sm:$0xff]  ;;  %v486_v47 = vld [vmem:[%s1120_s7 + $0xb8] sm:$0xff]  ;;  %v487_v52 = vld [vmem:[%s1120_s7 + $0xc0] sm:$0xff] }
  0x4d   :  { %671 = vmatpush1.bf16.msra.mxu1 %v670_v5  ;;  %v329_v5 = vld [vmem:[#allocation5 + $0x88] sm:$0xff]  ;;  %713 = vmatprep.subr.bf16.mxu0 %v712_v2  ;;  %v754_v1 = vpack.c.bf16 %v366_v0, %v364_v63  ;;  %v72_v2 = vlaneseq  ;;  %v370_v21 = vld [vmem:[#allocation5 + $0x1d0] sm:$0xff]  ;;  %v470_v51 = vld [vmem:[%s1120_s7 + $0x38] sm:$0xff] }
  0x4e   :  { %673 = vmatprep.subr.bf16.mxu1 %v672_v6  ;;  %v331_v6 = vld [vmem:[#allocation5 + $0x98] sm:$0xff]  ;;  %v374_v27 = vld [vmem:[#allocation5 + $0x1f0] sm:$0xff]  ;;  %v488_v53 = vld [vmem:[%s1120_s7 + $0xc8] sm:$0xff] }
  0x4f   :  { %v716_v8 = vpack.c.bf16 %v331_v6, %v329_v5  ;;  %715 = vmatpush1.bf16.msra.mxu0 %v714_v7  ;;  %v73_v3 = vshrl.u32 %v72_v2, 7  ;;  %v70_v5 = vld [vmem:[%s1115_s2] sm:$0x3]  ;;  %v472_v57 = vld [vmem:[%s1120_s7 + $0x48] sm:$0xff]  ;;  %v489_v58 = vld [vmem:[%s1120_s7 + $0xd0] sm:$0xff] }
  0x50   :  { %v490_v59 = vld [vmem:[%s1120_s7 + $0xd8] sm:$0xff] }
  0x51   :  { %675 = vmatpush1.bf16.msra.mxu1 %v674_v11  ;;  %v333_v11 = vld [vmem:[#allocation5 + $0xa8] sm:$0xff]  ;;  %717 = vmatprep.subr.bf16.mxu0 %v716_v8  ;;  %v983_v4 = vsub.s32 0, %v73_v3  ;;  %v988_v6 = vsub.s32 1, %v73_v3  ;;  %v474_v63 = vld [vmem:[%s1120_s7 + $0x58] sm:$0xff] }
  0x52   :  { %677 = vmatprep.subr.bf16.mxu1 %v676_v12  ;;  %v335_v12 = vld [vmem:[#allocation5 + $0xb8] sm:$0xff] }
  0x53   :  { %v720_v14 = vpack.c.bf16 %v335_v12, %v333_v11  ;;  %719 = vmatpush1.bf16.msra.mxu0 %v718_v13  ;;  %v75_v7 = vrot.slane %v70_v5, %v983_v4  ;;  %v79_v8 = vrot.slane %v70_v5, %v988_v6 }
  0x55   :  { %679 = vmatpush1.bf16.msra.mxu1 %v678_v17  ;;  %v337_v17 = vld [vmem:[#allocation5 + $0xc8] sm:$0xff]  ;;  %721 = vmatprep.subr.bf16.mxu0 %v720_v14 }
  0x56   :  { %681 = vmatprep.subr.bf16.mxu1 %v680_v18  ;;  %v339_v18 = vld [vmem:[#allocation5 + $0xd8] sm:$0xff] }
  0x57   :  { %v724_v20 = vpack.c.bf16 %v339_v18, %v337_v17  ;;  %723 = vmatpush1.bf16.msra.mxu0 %v722_v19  ;;  %v369_v17 = vld [vmem:[#allocation5 + $0x1c8] sm:$0xff]  ;;  %v371_v18 = vld [vmem:[#allocation5 + $0x1d8] sm:$0xff] }
  0x58   :  { %v756_v19 = vpack.c.bf16 %v371_v18, %v369_v17  ;;  %v475_v17 = vld [vmem:[%s1120_s7 + $0x60] sm:$0xff]  ;;  %v476_v18 = vld [vmem:[%s1120_s7 + $0x68] sm:$0xff] }
  0x59   :  { %683 = vmatpush1.bf16.msra.mxu1 %v682_v23  ;;  %v341_v23 = vld [vmem:[#allocation5 + $0xe8] sm:$0xff]  ;;  %725 = vmatprep.subr.bf16.mxu0 %v724_v20  ;;  %v368_v20 = vld [vmem:[#allocation5 + $0x1c0] sm:$0xff] }
  0x5a   :  { %685 = vmatprep.subr.bf16.mxu1 %v684_v24  ;;  %v343_v24 = vld [vmem:[#allocation5 + $0xf8] sm:$0xff]  ;;  %v758_v22 = vpack.c.bf16 %v370_v21, %v368_v20  ;;  %v493_v20 = vld [vmem:[%s1120_s7 + $0xf0] sm:$0xff] }
  0x5b   :  { %v728_v26 = vpack.c.bf16 %v343_v24, %v341_v23  ;;  %727 = vmatpush1.bf16.msra.mxu0 %v726_v25  ;;  %v373_v23 = vld [vmem:[#allocation5 + $0x1e8] sm:$0xff]  ;;  %v375_v24 = vld [vmem:[#allocation5 + $0x1f8] sm:$0xff] }
  0x5c   :  { %v760_v25 = vpack.c.bf16 %v375_v24, %v373_v23  ;;  %v494_v21 = vld [vmem:[%s1120_s7 + $0xf8] sm:$0xff]  ;;  %v477_v23 = vld [vmem:[%s1120_s7 + $0x70] sm:$0xff] }
  0x5d   :  { %687 = vmatpush1.bf16.msra.mxu1 %v686_v29  ;;  %v345_v29 = vld [vmem:[#allocation5 + $0x108] sm:$0xff]  ;;  %729 = vmatprep.subr.bf16.mxu0 %v728_v26  ;;  %v372_v26 = vld [vmem:[#allocation5 + $0x1e0] sm:$0xff]  ;;  %v478_v24 = vld [vmem:[%s1120_s7 + $0x78] sm:$0xff] }
  0x5e   :  { %689 = vmatprep.subr.bf16.mxu1 %v688_v30  ;;  %v347_v30 = vld [vmem:[#allocation5 + $0x118] sm:$0xff]  ;;  %v762_v28 = vpack.c.bf16 %v374_v27, %v372_v26  ;;  %v376_v26 = vld [vmem:[%s1119_s6] sm:$0x3]  ;;  %s881_s6 = smov [#allocation7]  }
  0x5f   :  { %v732_v32 = vpack.c.bf16 %v347_v30, %v345_v29  ;;  %731 = vmatpush1.bf16.msra.mxu0 %v730_v31  ;;  %v479_v29 = vld [vmem:[%s1120_s7 + $0x80] sm:$0xff]  ;;  %v480_v30 = vld [vmem:[%s1120_s7 + $0x88] sm:$0xff]  ;;  %v381_v27 = vrot.slane %v376_v26, %v983_v4  ;;  %s581_s22 = sshll.u32 %s881_s6, 4  ;;  %s582_s22 = int_to_ptr.vmem [resolvable:$true] %s581_s22 }
  0x60   :  { %v463_v31 = vld [vmem:[%s1120_s7] sm:$0xff]  ;;  %s848_s23 = scalar_lea.vmem %s582_s22, 128  ;;  %p853_p3 = scmp.lt.s32.totalorder %s582_s22, %s582_s22 }
  0x61   :  { %691 = vmatpush1.bf16.msra.mxu1 %v690_v33  ;;  %v344_v33 = vld [vmem:[#allocation5 + $0x100] sm:$0xff]  ;;  %733 = vmatprep.subr.bf16.mxu0 %v732_v32  ;;  %v764_v32 = vpack.c.bf16 %v480_v30, %v479_v29  ;;  %p849_p2 = scmp.ne.s32.totalorder %s582_s22, %s848_s23  ;;  %p854_p4 = scmp.lt.s32.totalorder %s848_s23, %s848_s23 }
  0x62   :  { %693 = vmatprep.subr.bf16.mxu1 %v692_v36  ;;  %v351_v36 = vld [vmem:[#allocation5 + $0x138] sm:$0xff]  ;;  %v734_v37 = vpack.c.bf16 %v346_v34, %v344_v33  ;;  %v464_v33 = vld [vmem:[%s1120_s7 + $0x8] sm:$0xff]  ;;  %v481_v34 = vld [vmem:[%s1120_s7 + $0x90] sm:$0xff] }
  0x63   :  { %v736_v38 = vpack.c.bf16 %v351_v36, %v349_v35  ;;  %v482_v35 = vld [vmem:[%s1120_s7 + $0x98] sm:$0xff]  ;;  %v766_v36 = vpack.c.bf16 %v464_v33, %v463_v31  ;;  %p855_p5 = por %p854_p4, %p853_p3 }
  0x64   :  { %735 = vmatpush1.bf16.msra.mxu0 %v734_v37  ;;  %v768_v37 = vpack.c.bf16 %v482_v35, %v481_v34 }
  0x65   :  { %695 = vmatpush1.bf16.msra.mxu1 %v694_v39  ;;  %v348_v39 = vld [vmem:[#allocation5 + $0x120] sm:$0xff]  ;;  %737 = vmatprep.subr.bf16.mxu0 %v736_v38  ;;  %v465_v38 = vld [vmem:[%s1120_s7 + $0x10] sm:$0xff]  ;;  %p856_p6 = pnand %p855_p5, %p849_p2 }
  0x66   :  { %697 = vmatprep.subr.bf16.mxu1 %v696_v42  ;;  %v355_v42 = vld [vmem:[#allocation5 + $0x158] sm:$0xff]  ;;  %v738_v43 = vpack.c.bf16 %v350_v40, %v348_v39  ;;  %v483_v40 = vld [vmem:[%s1120_s7 + $0xa0] sm:$0xff] }
  0x67   :  { %v740_v44 = vpack.c.bf16 %v355_v42, %v353_v41  ;;  %v466_v39 = vld [vmem:[%s1120_s7 + $0x18] sm:$0xff]  ;;  %v484_v41 = vld [vmem:[%s1120_s7 + $0xa8] sm:$0xff] }
  0x68   :  { %739 = vmatpush1.bf16.msra.mxu0 %v738_v43  ;;  %v770_v42 = vpack.c.bf16 %v466_v39, %v465_v38  ;;  %v772_v43 = vpack.c.bf16 %v484_v41, %v483_v40  ;;  %v592_v38 = vld [vmem:[%s1121_s8] ss:$0 sm:$0xff] }
  0x69   :  { %699 = vmatpush1.bf16.msra.mxu1 %v698_v45  ;;  %v352_v45 = vld [vmem:[#allocation5 + $0x140] sm:$0xff]  ;;  %741 = vmatprep.subr.bf16.mxu0 %v740_v44 }
  0x6a   :  { %v742_v49 = vpack.c.bf16 %v354_v46, %v352_v45  ;;  %765 = vmatprep.subr.bf16.mxu1 %v764_v32  ;;  %v467_v44 = vld [vmem:[%s1120_s7 + $0x20] sm:$0xff]  ;;  %v468_v45 = vld [vmem:[%s1120_s7 + $0x28] sm:$0xff]  ;;  %v485_v46 = vld [vmem:[%s1120_s7 + $0xb0] sm:$0xff] }
  0x6b   :  { %v774_v48 = vpack.c.bf16 %v468_v45, %v467_v44 }
  0x6c   :  { %743 = vmatpush1.bf16.msra.mxu0 %v742_v49  ;;  %v776_v49 = vpack.c.bf16 %v486_v47, %v485_v46 }
  0x6d   :  { %745 = vmatprep.subr.bf16.mxu0 %v744_v50  ;;  %v469_v50 = vld [vmem:[%s1120_s7 + $0x30] sm:$0xff] }
  0x6e   :  { %v778_v54 = vpack.c.bf16 %v470_v51, %v469_v50 }
  0x70   :  { %747 = vmatpush1.bf16.msra.mxu0 %v746_v55  ;;  %v780_v55 = vpack.c.bf16 %v488_v53, %v487_v52 }
  0x71   :  { %749 = vmatprep.subr.bf16.mxu0 %v748_v56  ;;  %v471_v56 = vld [vmem:[%s1120_s7 + $0x40] sm:$0xff] }
  0x72   :  { %v782_v60 = vpack.c.bf16 %v472_v57, %v471_v56 }
  0x74   :  { %751 = vmatpush1.bf16.msra.mxu0 %v750_v61  ;;  %v784_v61 = vpack.c.bf16 %v490_v59, %v489_v58 }
  0x75   :  { %753 = vmatprep.subr.bf16.mxu0 %v752_v62  ;;  %v473_v62 = vld [vmem:[%s1120_s7 + $0x50] sm:$0xff] }
  0x76   :  { %v786_v0 = vpack.c.bf16 %v474_v63, %v473_v62 }
  0x78   :  { %755 = vmatpush1.bf16.msra.mxu0 %v754_v1  ;;  %v225_v1 = vld [vmem:[%s1117_s4] sm:$0x3] }
  0x79   :  { %757 = vmatprep.subr.bf16.mxu0 %v756_v19  ;;  %v230_v2 = vrot.slane %v225_v1, %v983_v4  ;;  %v234_v3 = vrot.slane %v225_v1, %v988_v6  ;;  %v790_v19 = vpack.c.bf16 %v476_v18, %v475_v17 }
  0x7c   :  { %759 = vmatpush1.bf16.msra.mxu0 %v758_v22  ;;  %v792_v22 = vpack.c.bf16 %v494_v21, %v493_v20 }
  0x7d   :  { %761 = vmatprep.subr.bf16.mxu0 %v760_v25  ;;  %v794_v25 = vpack.c.bf16 %v478_v24, %v477_v23 }
  0x80   :  { %763 = vmatpush1.bf16.msra.mxu0 %v762_v28  ;;  %v385_v28 = vrot.slane %v376_v26, %v988_v6 }
 0x104   :  { %v152_v9 = vpop.f32.mrb[0].mxu0 }
 0x105   :  { %v153_v10 = vadd.f32 %v152_v9, %v75_v7  ;;  %v154_v11 = vpop.f32.mrb[1].mxu0 }
 0x106   :  { %v155_v12 = vadd.f32 %v154_v11, %v79_v8 }
 0x107   :  { %v157_v13 = vmul.f32 0.01, %v153_v10 }
 0x108   :  { %v158_v14 = vmul.f32 0.01, %v155_v12 }
 0x109   :  { %v159_v16 = vmax.f32 %v153_v10, %v157_v13 }
 0x10a   :  { %v160_v15 = vmax.f32 %v155_v12, %v158_v14  ;;  %v491_v14 = vld [vmem:[%s1120_s7 + $0xe0] sm:$0xff] }
 0x10c   :  { %301 = vmatprep.mubr.f32.mxu1 %v160_v15  ;;  %v492_v15 = vld [vmem:[%s1120_s7 + $0xe8] sm:$0xff] }
 0x10d   :  { %302 = vmatmul.mubr.f32.vlgmr.msra.gmra.mrb[0].mxu1 %v159_v16  ;;  %v788_v16 = vpack.c.bf16 %v492_v15, %v491_v14 }
 0x10e   :  { %767 = vmatpush3.bf16.msra.mxu1 %v766_v36 }
 0x10f   :  { %769 = vmatprep.subr.bf16.mxu1 %v768_v37 }
 0x112   :  { %771 = vmatpush3.bf16.msra.mxu1 %v770_v42 }
 0x113   :  { %773 = vmatprep.subr.bf16.mxu1 %v772_v43 }
 0x116   :  { %775 = vmatpush3.bf16.msra.mxu1 %v774_v48 }
 0x117   :  { %777 = vmatprep.subr.bf16.mxu1 %v776_v49 }
 0x11a   :  { %779 = vmatpush3.bf16.msra.mxu1 %v778_v54 }
 0x11b   :  { %781 = vmatprep.subr.bf16.mxu1 %v780_v55 }
 0x11e   :  { %783 = vmatpush3.bf16.msra.mxu1 %v782_v60 }
 0x11f   :  { %785 = vmatprep.subr.bf16.mxu1 %v784_v61 }
 0x122   :  { %787 = vmatpush3.bf16.msra.mxu1 %v786_v0 }
 0x123   :  { %789 = vmatprep.subr.bf16.mxu1 %v788_v16 }
 0x126   :  { %791 = vmatpush3.bf16.msra.mxu1 %v790_v19 }
 0x127   :  { %793 = vmatprep.subr.bf16.mxu1 %v792_v22 }
 0x12a   :  { %795 = vmatpush3.bf16.msra.mxu1 %v794_v25 }
 0x1e0   :  { %v303_v5 = vpop.f32.mrb[0].mxu1 }
 0x1e1   :  { %v304_v7 = vadd.f32 %v303_v5, %v230_v2  ;;  %v305_v8 = vpop.f32.mrb[1].mxu1 }
 0x1e2   :  { %v306_v9 = vadd.f32 %v305_v8, %v234_v3 }
 0x1e3   :  { %v308_v10 = vmul.f32 0.01, %v304_v7 }
 0x1e4   :  { %v309_v11 = vmul.f32 0.01, %v306_v9 }
 0x1e5   :  { %v310_v13 = vmax.f32 %v304_v7, %v308_v10 }
 0x1e6   :  { %v311_v12 = vmax.f32 %v306_v9, %v309_v11 }
 0x1e8   :  { %452 = vmatprep.mubr.f32.mxu0 %v311_v12 }
 0x1e9   :  { %453 = vmatmul.mubr.f32.vlgmr.msra.gmra.mrb[2].mxu0 %v310_v13 }
 0x2bc   :  { %v454_v29 = vpop.f32.mrb[2].mxu0 }
 0x2bd   :  { %v455_v30 = vadd.f32 %v454_v29, %v381_v27  ;;  %v456_v31 = vpop.f32.mrb[3].mxu0 }
 0x2be   :  { %v457_v32 = vadd.f32 %v456_v31, %v385_v28 }
 0x2bf   :  { %v459_v33 = vmul.f32 0.01, %v455_v30 }
 0x2c0   :  { %v460_v34 = vmul.f32 0.01, %v457_v32 }
 0x2c1   :  { %v461_v36 = vmax.f32 %v455_v30, %v459_v33 }
 0x2c2   :  { %v462_v35 = vmax.f32 %v457_v32, %v460_v34 }
 0x2c4   :  { %566 = vmatprep.mubr.f32.mxu1 %v462_v35 }
 0x2c5   :  { %567 = vmatmul.mubr.f32.vlgmr.msra.gmra.mrb[2].mxu1 %v461_v36 }
 0x398   :  { %v625_v37 = vpop.f32.mrb[2].mxu1 }
 0x399   :  { %v626_v39 = vpop.f32.mrb[3].mxu1 }
 0x39a   :  { %v627_v40 = vadd.f32 %v626_v39, %v625_v37 }
 0x39c   :  { %v569_v4 = vadd.f32 %v627_v40, %v592_v38 }
 0x39e   :  { %802 = vtanh.f32 %v569_v4 }
 0x3a8   :  { %v803_v6 = vpop.eup %802 }
 0x3a9   :  { %574 = vst.msk [vmem:[#allocation7] sm:$0xff] %vm573_vm1, %v803_v6 }
 0x3aa   :  { %859 = shalt.err (!%p856_p6)
}
 0x3ab   :  { %s860_s8 = scalar_lea.hbm %s1122_s9, 128 }
 0x3ac   :  { %p861_p7 = scmp.ne.s32.totalorder %s1122_s9, %s860_s8  ;;  %p864_p8 = scmp.lt.u32.totalorder %s860_s8, %s1122_s9 }
 0x3ae   :  { %p866_p9 = pnand %p864_p8, %p861_p7 }
 0x3b0   :  { %869 = shalt.err (!%p866_p9)
}
 0x3b1   :  { %584 = dma.vmem_to_hbm [thread:$0]  %s582_s22, 128, %s1122_s9, [#allocation4]  }
 0x3b2   :  { %874 = dma.done.wait [#allocation4], 128  }
 0x3b3   :  { %875 = vsyncadd [#allocation4], 4294967168 }
 0x3b4   :  { %588 = vsyncpa [#allocation3], 1 }
 0x3b5   :  { %589 = vsyncpa [#allocation6], 1 }
 0x3b6   :  { %590 = vsyncpa [#allocation4], 1 }

</bundles_post_ra>
